<compile_context>
chip_gen: v5e
topology: v5e:2x2
jax: 0.10.0
libtpu: 0.0.40
codegen_flags: <defaults>
</compile_context>

<pallas_src>
import math
from functools import partial

import jax
import jax.numpy as jnp
from jax.experimental import pallas as pl
from jax.experimental.pallas import tpu as pltpu

LANE = 128
SUBLANE = 8
BF16_SUBLANE = 16  # bf16 packs 16 sublanes per vreg


def _round_up(n, m):
    return ((n + m - 1) // m) * m


def _cdiv(a, b):
    return (a + b - 1) // b


def _pad2(a, rows, cols):
    return jnp.pad(a, ((0, rows - a.shape[0]), (0, cols - a.shape[1])))


def pack_params(params, compute_dtype=jnp.bfloat16):
    """One-time model packing (hoisted out of the per-call path).

    * advantage + value heads fused into a single [Wa | Wv] matrix,
    * hidden / head output dims zero-padded to a multiple of 128 lanes so
      every matmul output and store stays lane-dense,
    * matmul operands cast to compute_dtype (bf16 -> MXU peak, half the
      weight DMA), biases kept f32,
    * W1's contraction dim (input_dim) is left unpadded so x can be fed to
      the kernel as-is (f32, no wrapper-side re-staging).
    """
    in_dim, H = params["w1"].shape
    A = params["wa"].shape[1]
    h_p = _round_up(H, LANE)
    head_p = _round_up(A + 1, LANE)  # [adv | val | zero pad] -> lane dense
    return dict(
        w1=_pad2(params["w1"], in_dim, h_p).astype(compute_dtype),
        w2=_pad2(params["w2"], h_p, h_p).astype(compute_dtype),
        wh=_pad2(jnp.concatenate([params["wa"], params["wv"]], axis=1),
                 h_p, head_p).astype(compute_dtype),
        b1=_pad2(params["b1"], 1, h_p).astype(jnp.float32),
        b2=_pad2(params["b2"], 1, h_p).astype(jnp.float32),
        bh=_pad2(jnp.concatenate([params["ba"], params["bv"]], axis=1),
                 1, head_p).astype(jnp.float32),
    )


def rainbow_forward(x, packed, *, out_dim, compute_dtype=jnp.bfloat16,
                    tb_max=512):
    """out = value + advantage - advantage.mean()   (global scalar mean)."""
    B, in_dim = x.shape
    A = out_dim
    h_p = packed["w1"].shape[1]
    head_p = packed["wh"].shape[1]
    cd = compute_dtype
    inv_ba = 1.0 / float(B * A)

    # Weights: constant index maps -> DMA'd once, resident in VMEM across steps.
    w_specs = [
        pl.BlockSpec((in_dim, h_p), lambda *_: (0, 0)),   # w1
        pl.BlockSpec((1, h_p), lambda *_: (0, 0)),        # b1
        pl.BlockSpec((h_p, h_p), lambda *_: (0, 0)),      # w2
        pl.BlockSpec((1, h_p), lambda *_: (0, 0)),        # b2
        pl.BlockSpec((h_p, head_p), lambda *_: (0, 0)),   # wh = [Wa | Wv]
        pl.BlockSpec((1, head_p), lambda *_: (0, 0)),     # bh = [ba | bv]
    ]
    weights = (packed["w1"], packed["b1"], packed["w2"], packed["b2"],
               packed["wh"], packed["bh"])

    def _head(x_ref, w1_ref, b1_ref, w2_ref, b2_ref, wh_ref, bh_ref):
        # x stays f32 in HBM; cast to the MXU dtype in-register.
        h1 = jnp.dot(x_ref[...].astype(cd), w1_ref[...],
                     preferred_element_type=jnp.float32)
        h1 = jnp.maximum(h1 + b1_ref[...], 0.0)
        h2 = jnp.dot(h1.astype(cd), w2_ref[...],
                     preferred_element_type=jnp.float32)
        h2 = jnp.maximum(h2 + b2_ref[...], 0.0)
        head = jnp.dot(h2.astype(cd), wh_ref[...],
                       preferred_element_type=jnp.float32) + bh_ref[...]
        return head  # [:, :A] = advantage, [:, A] = value, [:, A+1:] = 0

    # ---------------- small batch (one tile): fully fused single pass -------
    if B <= tb_max:
        def fused_kernel(x_ref, w1_ref, b1_ref, w2_ref, b2_ref, wh_ref, bh_ref,
                         out_ref):
            head = _head(x_ref, w1_ref, b1_ref, w2_ref, b2_ref, wh_ref, bh_ref)
            val = head[:, A:A + 1]
            # Padded lanes of head are exactly zero (wh/bh zero-padded), so
            # the global advantage sum is sum(head) minus the value column.
            adv_mean = (jnp.sum(head) - jnp.sum(val)) * inv_ba
            out_ref[...] = (head + val - adv_mean).astype(out_ref.dtype)

        out = pl.pallas_call(
            fused_kernel,
            out_shape=jax.ShapeDtypeStruct((B, head_p), jnp.float32),
            grid=(1,),
            in_specs=[pl.BlockSpec((B, in_dim), lambda i: (0, 0))] + w_specs,
            out_specs=pl.BlockSpec((B, head_p), lambda i: (0, 0)),
        )(x, *weights)
        return out[:, :A]

    # ---------------- large batch: tiled pass + fused XLA finalize ----------
    tb = _round_up(min(tb_max, B), BF16_SUBLANE)     # bf16 sublane packing
    num_tiles = _cdiv(B, tb)
    # 2-way TensorCore split ("parallel" leading axis) when it costs nothing;
    # v5e/v6e (single TC) are unaffected.
    num_cores = 2 if num_tiles % 2 == 0 else 1
    tiles_per_core = num_tiles // num_cores
    b_p = num_tiles * tb
    need_row_mask = b_p != B
    xp = _pad2(x, b_p, in_dim) if need_row_mask else x   # f32, rows only

    def tiled_kernel(x_ref, w1_ref, b1_ref, w2_ref, b2_ref, wh_ref, bh_ref,
                     comb_ref, asum_ref):
        c = pl.program_id(0)
        i = pl.program_id(1)

        @pl.when(i == 0)
        def _():
            asum_ref[...] = jnp.zeros_like(asum_ref)

        head = _head(x_ref, w1_ref, b1_ref, w2_ref, b2_ref, wh_ref, bh_ref)
        val = head[:, A:A + 1]

        # Per-row advantage sum: padded lanes are exactly zero, only the
        # value column has to be removed -> no (tb,128) iota/where filler.
        row_sum = jnp.sum(head, axis=1, keepdims=True) - val       # (tb, 1)
        if need_row_mask:
            # only padded *batch rows* need masking (bias makes them nonzero)
            row0 = (c * tiles_per_core + i) * tb
            rid = jax.lax.broadcasted_iota(jnp.int32, row_sum.shape, 0) + row0
            row_sum = jnp.where(rid < B, row_sum, 0.0)
        asum_ref[...] += jnp.sum(row_sum)        # per-core partial adv sum

        # Pre-combine val + adv so the finalize is a single fused XLA subtract.
        comb_ref[...] = (head + val).astype(comb_ref.dtype)

    comb, asum = pl.pallas_call(
        tiled_kernel,
        out_shape=(
            jax.ShapeDtypeStruct((b_p, head_p), jnp.float32),
            jax.ShapeDtypeStruct((num_cores * SUBLANE, LANE), jnp.float32),
        ),
        grid=(num_cores, tiles_per_core),
        in_specs=[pl.BlockSpec(
            (tb, in_dim), lambda c, i: (c * tiles_per_core + i, 0))] + w_specs,
        out_specs=(
            pl.BlockSpec((tb, head_p),
                         lambda c, i: (c * tiles_per_core + i, 0)),
            pl.BlockSpec((SUBLANE, LANE), lambda c, i: (c, 0)),   # per-core acc
        ),
        compiler_params=pltpu.CompilerParams(
            dimension_semantics=("parallel", "arbitrary")),
    )(xp, *weights)

    adv_mean = jnp.sum(asum[0::SUBLANE, 0]) * inv_ba
    # Fused slice + subtract: only (B, A) f32 is written back to HBM.
    return comb[:B, :A] - adv_mean


def init_params(key, input_dim, output_dim, hidden_dim):
    """Deterministic init mirroring nn.Linear's default U(-1/sqrt(fan_in), +)."""
    def linear(k, fan_in, fan_out):
        kw, kb = jax.random.split(k)
        bound = 1.0 / math.sqrt(fan_in)
        w = jax.random.uniform(kw, (fan_in, fan_out), jnp.float32, -bound, bound)
        b = jax.random.uniform(kb, (1, fan_out), jnp.float32, -bound, bound)
        return w, b

    k1, k2, k3, k4 = jax.random.split(key, 4)
    w1, b1 = linear(k1, input_dim, hidden_dim)
    w2, b2 = linear(k2, hidden_dim, hidden_dim)
    wa, ba = linear(k3, hidden_dim, output_dim)
    wv, bv = linear(k4, hidden_dim, 1)
    return dict(w1=w1, b1=b1, w2=w2, b2=b2, wa=wa, ba=ba, wv=wv, bv=bv)


def reference_forward(x, p, compute_dtype=jnp.float32):
    """Pure-JAX reference; compute_dtype matches the kernel's mixed precision."""
    cd = compute_dtype
    h1 = jnp.maximum(jnp.dot(x.astype(cd), p["w1"].astype(cd),
                             preferred_element_type=jnp.float32) + p["b1"], 0.0)
    h2 = jnp.maximum(jnp.dot(h1.astype(cd), p["w2"].astype(cd),
                             preferred_element_type=jnp.float32) + p["b2"], 0.0)
    adv = jnp.dot(h2.astype(cd), p["wa"].astype(cd),
                  preferred_element_type=jnp.float32) + p["ba"]
    val = jnp.dot(h2.astype(cd), p["wv"].astype(cd),
                  preferred_element_type=jnp.float32) + p["bv"]
    return val + adv - jnp.mean(adv)


if __name__ == "__main__":
    B, input_dim, output_dim, hidden_dim = 2, 16, 4, 32

    key = jax.random.PRNGKey(0)
    kx, kp = jax.random.split(key)
    x = jax.random.normal(kx, (B, input_dim), jnp.float32)
    params = init_params(kp, input_dim, output_dim, hidden_dim)

    # weight packing is per-model, not per-call
    packed = pack_params(params, compute_dtype=jnp.bfloat16)

    fwd = jax.jit(partial(rainbow_forward, out_dim=output_dim,
                          compute_dtype=jnp.bfloat16))
    out = jax.block_until_ready(fwd(x, packed))

    ref_matched = reference_forward(x, params, compute_dtype=jnp.bfloat16)
    ref_f32 = reference_forward(x, params, compute_dtype=jnp.float32)

    assert out.shape == (B, output_dim)
    # apples-to-apples (same bf16 operand rounding) check: tight tolerance
    assert jnp.allclose(out, ref_matched, atol=2e-3, rtol=2e-3), (out, ref_matched)
    # sanity check against full-f32 math: bf16 operand rounding only
    assert jnp.allclose(out, ref_f32, atol=1e-1, rtol=1e-1), (out, ref_f32)

    # also exercise the tiled / megacore / row-masked path once (B > tb_max)
    B2 = 100
    x2 = jax.random.normal(kx, (B2, input_dim), jnp.float32)
    fwd2 = jax.jit(partial(rainbow_forward, out_dim=output_dim,
                           compute_dtype=jnp.bfloat16, tb_max=32))
    out2 = jax.block_until_ready(fwd2(x2, packed))
    ref2 = reference_forward(x2, params, compute_dtype=jnp.bfloat16)
    assert out2.shape == (B2, output_dim)
    assert jnp.allclose(out2, ref2, atol=2e-3, rtol=2e-3), (out2, ref2)

    print("KERNEL_OK")
</pallas_src>

<mosaic_0001>
module attributes {stable_mosaic.version = 11 : i64} {
  func.func @fused_kernel(%arg0: i32, %arg1: memref<2x16xf32, #tpu.memory_space<vmem>>, %arg2: memref<16x128xbf16, #tpu.memory_space<vmem>>, %arg3: memref<1x128xf32, #tpu.memory_space<vmem>>, %arg4: memref<128x128xbf16, #tpu.memory_space<vmem>>, %arg5: memref<1x128xf32, #tpu.memory_space<vmem>>, %arg6: memref<128x128xbf16, #tpu.memory_space<vmem>>, %arg7: memref<1x128xf32, #tpu.memory_space<vmem>>, %arg8: memref<2x128xf32, #tpu.memory_space<vmem>>) attributes {dimension_semantics = [#tpu.dimension_semantics<arbitrary>], iteration_bounds = array<i64: 1>, scalar_prefetch = 0 : i64, scratch_operands = 0 : i64, tpu.core_type = #tpu.core_type<tc>, window_params = [{pipeline_mode = #tpu.pipeline_mode<synchronous>, transform_indices = @transform_0, window_bounds = array<i64: 2, 16>}, {pipeline_mode = #tpu.pipeline_mode<synchronous>, transform_indices = @transform_1, window_bounds = array<i64: 16, 128>}, {pipeline_mode = #tpu.pipeline_mode<synchronous>, transform_indices = @transform_2, window_bounds = array<i64: 1, 128>}, {pipeline_mode = #tpu.pipeline_mode<synchronous>, transform_indices = @transform_3, window_bounds = array<i64: 128, 128>}, {pipeline_mode = #tpu.pipeline_mode<synchronous>, transform_indices = @transform_4, window_bounds = array<i64: 1, 128>}, {pipeline_mode = #tpu.pipeline_mode<synchronous>, transform_indices = @transform_5, window_bounds = array<i64: 128, 128>}, {pipeline_mode = #tpu.pipeline_mode<synchronous>, transform_indices = @transform_6, window_bounds = array<i64: 1, 128>}, {pipeline_mode = #tpu.pipeline_mode<synchronous>, transform_indices = @transform_7, window_bounds = array<i64: 2, 128>}]} {
    %c0 = arith.constant 0 : index
    %c0_0 = arith.constant 0 : index
    %0 = vector.load %arg1[%c0, %c0_0] : memref<2x16xf32, #tpu.memory_space<vmem>>, vector<2x16xf32>
    %1 = arith.truncf %0 : vector<2x16xf32> to vector<2x16xbf16>
    %c0_1 = arith.constant 0 : index
    %c0_2 = arith.constant 0 : index
    %2 = vector.load %arg2[%c0_1, %c0_2] : memref<16x128xbf16, #tpu.memory_space<vmem>>, vector<16x128xbf16>
    %cst = arith.constant dense<0.000000e+00> : vector<2x128xf32>
    %3 = tpu.matmul %1, %2, %cst {dimension_numbers = #tpu.dot_dimension_numbers<[1], [0], [0], [1], [0, 0, 1, 1], [], []>} : vector<2x16xbf16>, vector<16x128xbf16>, vector<2x128xf32> -> vector<2x128xf32>
    %c0_3 = arith.constant 0 : index
    %c0_4 = arith.constant 0 : index
    %4 = vector.load %arg3[%c0_3, %c0_4] : memref<1x128xf32, #tpu.memory_space<vmem>>, vector<1x128xf32>
    %5 = vector.broadcast %4 : vector<1x128xf32> to vector<2x128xf32>
    %6 = arith.addf %3, %5 : vector<2x128xf32>
    %cst_5 = arith.constant 0.000000e+00 : f32
    %7 = vector.broadcast %cst_5 : f32 to vector<2x128xf32>
    %8 = arith.maximumf %6, %7 : vector<2x128xf32>
    %9 = arith.truncf %8 : vector<2x128xf32> to vector<2x128xbf16>
    %c0_6 = arith.constant 0 : index
    %c0_7 = arith.constant 0 : index
    %10 = vector.load %arg4[%c0_6, %c0_7] : memref<128x128xbf16, #tpu.memory_space<vmem>>, vector<128x128xbf16>
    %cst_8 = arith.constant dense<0.000000e+00> : vector<2x128xf32>
    %11 = tpu.matmul %9, %10, %cst_8 {dimension_numbers = #tpu.dot_dimension_numbers<[1], [0], [0], [1], [0, 0, 1, 1], [], []>} : vector<2x128xbf16>, vector<128x128xbf16>, vector<2x128xf32> -> vector<2x128xf32>
    %c0_9 = arith.constant 0 : index
    %c0_10 = arith.constant 0 : index
    %12 = vector.load %arg5[%c0_9, %c0_10] : memref<1x128xf32, #tpu.memory_space<vmem>>, vector<1x128xf32>
    %13 = vector.broadcast %12 : vector<1x128xf32> to vector<2x128xf32>
    %14 = arith.addf %11, %13 : vector<2x128xf32>
    %cst_11 = arith.constant 0.000000e+00 : f32
    %15 = vector.broadcast %cst_11 : f32 to vector<2x128xf32>
    %16 = arith.maximumf %14, %15 : vector<2x128xf32>
    %17 = arith.truncf %16 : vector<2x128xf32> to vector<2x128xbf16>
    %c0_12 = arith.constant 0 : index
    %c0_13 = arith.constant 0 : index
    %18 = vector.load %arg6[%c0_12, %c0_13] : memref<128x128xbf16, #tpu.memory_space<vmem>>, vector<128x128xbf16>
    %cst_14 = arith.constant dense<0.000000e+00> : vector<2x128xf32>
    %19 = tpu.matmul %17, %18, %cst_14 {dimension_numbers = #tpu.dot_dimension_numbers<[1], [0], [0], [1], [0, 0, 1, 1], [], []>} : vector<2x128xbf16>, vector<128x128xbf16>, vector<2x128xf32> -> vector<2x128xf32>
    %c0_15 = arith.constant 0 : index
    %c0_16 = arith.constant 0 : index
    %20 = vector.load %arg7[%c0_15, %c0_16] : memref<1x128xf32, #tpu.memory_space<vmem>>, vector<1x128xf32>
    %21 = vector.broadcast %20 : vector<1x128xf32> to vector<2x128xf32>
    %22 = arith.addf %19, %21 : vector<2x128xf32>
    %23 = vector.extract_strided_slice %22 {offsets = [0, 4], sizes = [2, 1], strides = [1, 1]} : vector<2x128xf32> to vector<2x1xf32>
    %24 = vector.shape_cast %22 : vector<2x128xf32> to vector<1x2x128xf32>
    %cst_17 = arith.constant dense<0.000000e+00> : vector<1xf32>
    %25 = vector.multi_reduction <add>, %24, %cst_17 [1, 2] : vector<1x2x128xf32> to vector<1xf32>
    %26 = vector.shape_cast %25 : vector<1xf32> to vector<1x1x1xf32>
    %27 = vector.extract %26[0, 0, 0] : f32 from vector<1x1x1xf32>
    %28 = vector.shape_cast %23 : vector<2x1xf32> to vector<1x2x1xf32>
    %cst_18 = arith.constant dense<0.000000e+00> : vector<1xf32>
    %29 = vector.multi_reduction <add>, %28, %cst_18 [1, 2] : vector<1x2x1xf32> to vector<1xf32>
    %30 = vector.shape_cast %29 : vector<1xf32> to vector<1x1x1xf32>
    %31 = vector.extract %30[0, 0, 0] : f32 from vector<1x1x1xf32>
    %32 = arith.subf %27, %31 : f32
    %cst_19 = arith.constant 1.250000e-01 : f32
    %33 = arith.mulf %32, %cst_19 : f32
    %34 = vector.broadcast %23 : vector<2x1xf32> to vector<2x128xf32>
    %35 = arith.addf %22, %34 : vector<2x128xf32>
    %36 = vector.broadcast %33 : f32 to vector<2x128xf32>
    %37 = arith.subf %35, %36 : vector<2x128xf32>
    %c0_20 = arith.constant 0 : index
    %c0_21 = arith.constant 0 : index
    %38 = vector.load %arg8[%c0_20, %c0_21] : memref<2x128xf32, #tpu.memory_space<vmem>>, vector<2x128xf32>
    tpu.vector_store %arg8[%c0_20, %c0_21], %37 {strides = array<i32>} : memref<2x128xf32, #tpu.memory_space<vmem>>, vector<2x128xf32>,
    return
  }
  func.func @transform_0(%arg0: i32) -> (i32, i32) {
    %c0_i32 = arith.constant 0 : i32
    %c0_i32_0 = arith.constant 0 : i32
    %c0_i32_1 = arith.constant 0 : i32
    return %c0_i32, %c0_i32_0 : i32, i32
  }
  func.func @transform_1(%arg0: i32) -> (i32, i32) {
    %c0_i32 = arith.constant 0 : i32
    %c0_i32_0 = arith.constant 0 : i32
    %c0_i32_1 = arith.constant 0 : i32
    return %c0_i32, %c0_i32_0 : i32, i32
  }
  func.func @transform_2(%arg0: i32) -> (i32, i32) {
    %c0_i32 = arith.constant 0 : i32
    %c0_i32_0 = arith.constant 0 : i32
    %c0_i32_1 = arith.constant 0 : i32
    return %c0_i32, %c0_i32_0 : i32, i32
  }
  func.func @transform_3(%arg0: i32) -> (i32, i32) {
    %c0_i32 = arith.constant 0 : i32
    %c0_i32_0 = arith.constant 0 : i32
    %c0_i32_1 = arith.constant 0 : i32
    return %c0_i32, %c0_i32_0 : i32, i32
  }
  func.func @transform_4(%arg0: i32) -> (i32, i32) {
    %c0_i32 = arith.constant 0 : i32
    %c0_i32_0 = arith.constant 0 : i32
    %c0_i32_1 = arith.constant 0 : i32
    return %c0_i32, %c0_i32_0 : i32, i32
  }
  func.func @transform_5(%arg0: i32) -> (i32, i32) {
    %c0_i32 = arith.constant 0 : i32
    %c0_i32_0 = arith.constant 0 : i32
    %c0_i32_1 = arith.constant 0 : i32
    return %c0_i32, %c0_i32_0 : i32, i32
  }
  func.func @transform_6(%arg0: i32) -> (i32, i32) {
    %c0_i32 = arith.constant 0 : i32
    %c0_i32_0 = arith.constant 0 : i32
    %c0_i32_1 = arith.constant 0 : i32
    return %c0_i32, %c0_i32_0 : i32, i32
  }
  func.func @transform_7(%arg0: i32) -> (i32, i32) {
    %c0_i32 = arith.constant 0 : i32
    %c0_i32_0 = arith.constant 0 : i32
    %c0_i32_1 = arith.constant 0 : i32
    return %c0_i32, %c0_i32_0 : i32, i32
  }
}

</mosaic_0001>

<bundles_post_ra>
// kernel: rainbow_forward.1
= control target key start
LH: loop header
LB: loop body
LE: loop exit
PB: predicated region body
PF: predicated region fallthrough
CT: control target
= control target key end

     0   :  { %12 = vsyncpa [#allocation3], 0  ;;  %s685_s0 = inlined_call_operand.hbm [shape: f32[2,16], index: 0, kind: input, shape index: {}]   ;;  %s686_s1 = inlined_call_operand.hbm [shape: bf16[16,128], index: 1, kind: input, shape index: {}]   ;;  %s687_s2 = inlined_call_operand.hbm [shape: f32[1,128], index: 2, kind: input, shape index: {}]   ;;  %s688_s3 = inlined_call_operand.hbm [shape: bf16[128,128], index: 3, kind: input, shape index: {}]   ;;  %s689_s4 = inlined_call_operand.vmem [shape: f32[1,128], index: 4, kind: input, shape index: {}]   ;;  %s690_s5 = inlined_call_operand.hbm [shape: bf16[128,128], index: 5, kind: input, shape index: {}]   ;;  %s691_s6 = inlined_call_operand.vmem [shape: f32[1,128], index: 6, kind: input, shape index: {}]   ;;  %s692_s7 = inlined_call_operand.hbm [shape: f32[2,128], index: 7, kind: output, shape index: {}]  }
   0x1   :  { %13 = vsyncpa [#allocation6], 0 }
   0x2   :  { %14 = vsyncpa [#allocation9], 0  ;;  %s31_s26 = sshll.u32 %s686_s1, 4  ;;  %s32_s26 = int_to_ptr.hbm [resolvable:$true] %s31_s26 }
   0x3   :  { %15 = vsyncpa [#allocation4], 0  ;;  %s611_s27 = smov [#allocation5]   ;;  %s55_s8 = sshll.u32 %s688_s3, 4  ;;  %s56_s8 = int_to_ptr.hbm [resolvable:$true] %s55_s8 }
   0x4   :  { %s33_s28 = sshll.u32 %s611_s27, 4  ;;  %s612_s9 = smov 64   ;;  %s34_s28 = int_to_ptr.vmem [resolvable:$true] %s33_s28 }
   0x5   :  { %s613_s10 = smov 4   ;;  %s614_s11 = smov [#allocation8]  }
   0x6   :  { %39 = dma.hbm_to_vmem [thread:$0]  %s32_s26, 128, %s34_s28, [#allocation6], %s612_s9, %s612_s9, %s613_s10  }
   0x7   :  { %s57_s12 = sshll.u32 %s614_s11, 4  ;;  %s21_s15 = sshll.u32 %s685_s0, 4  ;;  %s58_s12 = int_to_ptr.vmem [resolvable:$true] %s57_s12  ;;  %s22_s15 = int_to_ptr.hbm [resolvable:$true] %s21_s15 }
   0x8   :  { %63 = dma.hbm_to_vmem [thread:$0]  %s56_s8, 1024, %s58_s12, [#allocation9], %s612_s9, %s612_s9, %s613_s10  }
   0x9   :  { %s45_s17 = sshll.u32 %s687_s2, 4  ;;  %s615_s18 = smov [#allocation2]   ;;  %s46_s17 = int_to_ptr.hbm [resolvable:$true] %s45_s17 }
   0xa   :  { %s23_s19 = sshll.u32 %s615_s18, 4  ;;  %s616_s3 = smov [#allocation7]   ;;  %s24_s19 = int_to_ptr.vmem [resolvable:$true] %s23_s19 }
   0xb   :  { %26 = dma.hbm_to_vmem [thread:$0]  %s22_s15, 32, %s24_s19, [#allocation3]  }
   0xc   :  { %s47_s20 = sshll.u32 %s616_s3, 4  ;;  %s70_s23 = sshll.u32 %s690_s5, 4  ;;  %s48_s20 = int_to_ptr.vmem [resolvable:$true] %s47_s20  ;;  %s71_s23 = int_to_ptr.hbm [resolvable:$true] %s70_s23 }
   0xd   :  { %50 = dma.hbm_to_vmem [thread:$0]  %s46_s17, 16, %s48_s20, [#allocation6]  }
   0xe   :  { %s617_s0 = smov [#allocation10]  }
   0xf   :  { %s72_s24 = sshll.u32 %s617_s0, 4  ;;  %s73_s24 = int_to_ptr.vmem [resolvable:$true] %s72_s24 }
  0x10   :  { %78 = dma.hbm_to_vmem [thread:$0]  %s71_s23, 1024, %s73_s24, [#allocation9], %s612_s9, %s612_s9, %s613_s10  }
  0x11   :  { %603 = dma.done.wait [#allocation3], 32  }
  0x12   :  { %604 = vsyncadd [#allocation3], 4294967264 }
  0x13   :  { %605 = dma.done.wait [#allocation6], 144  }
  0x14   :  { %606 = vsyncadd [#allocation6], 4294967152 }
  0x15   :  { %607 = dma.done.wait [#allocation9], 2048  }
  0x16   :  { %608 = vsyncadd [#allocation9], 4294965248  ;;  %v423_v0 = vld [vmem:[#allocation5] sm:$0xff]  ;;  %v102_v1 = vld [vmem:[#allocation2] sm:$0x3]  ;;  %vm116_vm0 = vcmask 130048  }
  0x17   :  { %v431_v2 = vld [vmem:[#allocation8 + $0x38] sm:$0xff]  ;;  %v103_v3 = vpack.c.bf16 %v102_v1, %v102_v1  ;;  %127 = vmatpush.bf16.msra.mxu0 %v423_v0  ;;  %v430_v4 = vld [vmem:[#allocation8 + $0x30] sm:$0xff]  ;;  %v429_v5 = vld [vmem:[#allocation8 + $0x28] sm:$0xff]  ;;  %s618_s27 = smov 124   ;;  %vm299_vm1 = vcmask 1041408   ;;  %v619_v36 = vmov 4  }
  0x18   :  { %203 = vmatpush.bf16.msra.mxu1 %v431_v2  ;;  %v428_v6 = vld [vmem:[#allocation8 + $0x20] sm:$0xff]  ;;  %v427_v7 = vld [vmem:[#allocation8 + $0x18] sm:$0xff]  ;;  %v426_v8 = vld [vmem:[#allocation8 + $0x10] sm:$0xff]  ;;  %454 = vset.pattern.permute.xlu1 %v619_v36  ;;  %vm314_vm2 = vcmask 1024   ;;  %s620_s29 = smov [#allocation11]   ;;  %s342_s11 = sshll.u32 %s692_s7, 4  ;;  %s343_s11 = int_to_ptr.hbm [resolvable:$true] %s342_s11 }
  0x19   :  { %v425_v9 = vld [vmem:[#allocation8 + $0x8] sm:$0xff]  ;;  %v424_v10 = vld [vmem:[#allocation8] sm:$0xff]  ;;  %v439_v11 = vld [vmem:[#allocation10 + $0x38] sm:$0xff]  ;;  %455 = vset.pattern.permute.xlu0 %v619_v36  ;;  %s340_s30 = sshll.u32 %s620_s29, 4  ;;  %s341_s30 = int_to_ptr.vmem [resolvable:$true] %s340_s30 }
  0x1a   :  { %358 = vmatmul.msk.bf16.vlgmr.msra.gmra.mxu0 %vm116_vm0, %v103_v3  ;;  %286 = vmatpush.bf16.msra.mxu2 %v439_v11  ;;  %v438_v12 = vld [vmem:[#allocation10 + $0x30] sm:$0xff]  ;;  %v437_v13 = vld [vmem:[#allocation10 + $0x28] sm:$0xff]  ;;  %v436_v14 = vld [vmem:[#allocation10 + $0x20] sm:$0xff] }
  0x1b   :  { %v435_v15 = vld [vmem:[#allocation10 + $0x18] sm:$0xff]  ;;  %v434_v16 = vld [vmem:[#allocation10 + $0x10] sm:$0xff]  ;;  %v433_v23 = vld [vmem:[#allocation10 + $0x8] sm:$0xff] }
  0x1c   :  { %204 = vmatpush.bf16.msra.mxu1 %v430_v4  ;;  %v456_v17 = vld [vmem:[#allocation7] ss:$0 sm:$0xff]  ;;  %v432_v24 = vld [vmem:[#allocation10] sm:$0xff]  ;;  %v457_v25 = vld [vmem:[%s689_s4] ss:$0 sm:$0xff] }
  0x1d   :  { %v458_v31 = vld [vmem:[%s691_s6] ss:$0 sm:$0xff] }
  0x1e   :  { %287 = vmatpush.bf16.msra.mxu2 %v438_v12 }
  0x20   :  { %205 = vmatpush.bf16.msra.mxu1 %v429_v5 }
  0x22   :  { %288 = vmatpush.bf16.msra.mxu2 %v437_v13 }
  0x24   :  { %206 = vmatpush.bf16.msra.mxu1 %v428_v6 }
  0x26   :  { %289 = vmatpush.bf16.msra.mxu2 %v436_v14 }
  0x28   :  { %207 = vmatpush.bf16.msra.mxu1 %v427_v7 }
  0x2a   :  { %290 = vmatpush.bf16.msra.mxu2 %v435_v15 }
  0x2c   :  { %208 = vmatpush.bf16.msra.mxu1 %v426_v8 }
  0x2e   :  { %291 = vmatpush.bf16.msra.mxu2 %v434_v16 }
  0x30   :  { %209 = vmatpush.bf16.msra.mxu1 %v425_v9 }
  0x32   :  { %292 = vmatpush.bf16.msra.mxu2 %v433_v23 }
  0x34   :  { %210 = vmatpush.bf16.msra.mxu1 %v424_v10 }
  0x36   :  { %293 = vmatpush.bf16.msra.mxu2 %v432_v24 }
  0x97   :  { %v129_v18 = vpop.f32.mrf.mxu0 }
  0x98   :  { %v130_v19 = vadd.f32 %v456_v17, %v129_v18 }
  0x9a   :  { %v133_v20 = vmax.f32 %v130_v19, 0.0 }
  0x9c   :  { %v134_v21 = vpack.c.bf16 %v133_v20, %v133_v20 }
  0x9e   :  { %211 = vmatmul.bf16.vlgmr.msra.gmra.mxu1 %v134_v21 }
  0x9f   :  { %v131_v22 = vpop.f32.mrf.mxu0 }
 0x11b   :  { %v212_v26 = vpop.f32.mrf.mxu1 }
 0x11c   :  { %v213_v27 = vadd.f32 %v457_v25, %v212_v26 }
 0x11e   :  { %v216_v28 = vmax.f32 %v213_v27, 0.0 }
 0x120   :  { %v217_v29 = vpack.c.bf16 %v216_v28, %v216_v28 }
 0x122   :  { %294 = vmatmul.bf16.vlgmr.msra.gmra.mxu2 %v217_v29 }
 0x123   :  { %v214_v30 = vpop.f32.mrf.mxu1 }
 0x1a5   :  { %v295_v32 = vpop.f32.mrf.mxu2 }
 0x1a6   :  { %v296_v33 = vadd.f32 %v458_v31, %v295_v32 }
 0x1a8   :  { %311 = vrot.lane.b32.xlu0 %v296_v33, %s618_s27  ;;  %v300_v35 = vsel %vm299_vm1, %v296_v33, 0.0 }
 0x1ad   :  { %v297_v34 = vpop.f32.mrf.mxu2 }
 0x1d2   :  { %301 = vadd.xlane.f32.xlu0 %v300_v35 }
 0x21a   :  { %v312_v37 = vpop.permute.xlu0 %311 }
 0x21b   :  { %v315_v38 = vsel %vm314_vm2, %v312_v37, 0.0 }
 0x21c   :  { %316 = vadd.xlane.f32.xlu1 %v315_v38 }
 0x235   :  { %328 = vperm.xlu1 %454, %v296_v33  }
 0x245   :  { %v302_v39 = vpop.xlane.xlu0 %301 }
 0x246   :  { %v303_v40 = vrot.slane %v302_v39, 4 }
 0x248   :  { %v304_v41 = vadd.f32 %v303_v40, %v302_v39 }
 0x24a   :  { %v305_v42 = vrot.slane %v304_v41, 2 }
 0x24c   :  { %v306_v43 = vadd.f32 %v305_v42, %v304_v41 }
 0x24e   :  { %v307_v44 = vrot.slane %v306_v43, 1 }
 0x250   :  { %v308_v45 = vadd.f32 %v307_v44, %v306_v43 }
 0x252   :  { %440 = vpush %v308_v45 }
 0x283   :  { %s441_s4 = spop %440 }
 0x28f   :  { %v317_v46 = vpop.xlane.xlu1 %316 }
 0x290   :  { %v318_v47 = vrot.slane %v317_v46, 4 }
 0x292   :  { %v319_v48 = vadd.f32 %v318_v47, %v317_v46 }
 0x294   :  { %v320_v49 = vrot.slane %v319_v48, 2 }
 0x296   :  { %v321_v50 = vadd.f32 %v320_v49, %v319_v48 }
 0x298   :  { %v322_v51 = vrot.slane %v321_v50, 1 }
 0x29a   :  { %v323_v52 = vadd.f32 %v322_v51, %v321_v50 }
 0x29c   :  { %442 = vpush %v323_v52 }
 0x2a7   :  { %v329_v53 = vpop.permute.xlu1 %328 }
 0x2a8   :  { %v331_v54 = vadd.f32 %v329_v53, %v296_v33 }
 0x2cd   :  { %s443_s6 = spop %442 }
 0x2ce   :  { %s325_s28 = ssub.f32 %s441_s4, %s443_s6 }
 0x2d0   :  { %s326_s8 = smul.f32 0.125, %s325_s28 }
 0x2d2   :  { %v332_v55 = vstv %s326_s8 }
 0x2d3   :  { %v333_v56 = vsub.f32 %v331_v54, %v332_v55 }
 0x2d5   :  { %334 = vst [vmem:[#allocation11] sm:$0x3] %v333_v56 }
 0x2d6   :  { %345 = dma.vmem_to_hbm [thread:$0]  %s341_s30, 32, %s343_s11, [#allocation4]  }
 0x2d7   :  { %609 = dma.done.wait [#allocation4], 32  }
 0x2d8   :  { %610 = vsyncadd [#allocation4], 4294967264 }
 0x2d9   :  { %350 = vsyncpa [#allocation3], 1 }
 0x2da   :  { %351 = vsyncpa [#allocation6], 1 }
 0x2db   :  { %352 = vsyncpa [#allocation9], 1 }
 0x2dc   :  { %353 = vsyncpa [#allocation4], 1 }

</bundles_post_ra>
